<compile_context>
chip_gen: v6e
topology: v6e:2x2x1
jax: 0.10.0
libtpu: 0.0.40
codegen_flags: <defaults>
</compile_context>

<pallas_src>
import numpy as np
import jax
import jax.numpy as jnp
from jax import lax
from jax.experimental import pallas as pl
from jax.experimental.pallas import tpu as pltpu

# ----------------------------- static config (small synthetic shapes) ----------
N        = 2            # batch
CIN_IMG  = 3            # RGB input channels
H_IMG    = 32           # input spatial size
W_IMG    = 32
STRIDE   = 4            # output stride of feat_1 (ResNet layer1)
HF, WF   = H_IMG // STRIDE, W_IMG // STRIDE
HFWF     = HF * WF                      # 64
HW       = H_IMG * W_IMG                # 1024 (lane-dense output width)
C1       = 24           # scaled-down stand-in for 256 channels
COUT     = 32           # decoder num_classes
D1, D2   = 6, 12        # early return -> only the first two dilated convs are used
PAD      = max(D1, D2)
NTAP     = 2 * 9        # 2 dilations x 9 taps
K        = NTAP * C1    # 432 im2col contraction depth
KPAD     = 512          # zero-pad contraction to a multiple of 128 lanes


# ----------------------------- Pallas kernel -----------------------------------
def decoder_kernel(xcols_ref, w_ref, b_ref, mT_ref, out_ref):
    # xcols_ref : (nb, HFWF, KPAD)  bf16 im2col'd features for this grid step
    # w_ref     : (KPAD, COUT)      bf16 combined (dilation, ky, kx, cin) conv weights
    # b_ref     : (1, COUT)         f32  folded bias (b1 + b2)
    # mT_ref    : (HFWF, HW)        bf16 transposed bilinear (align_corners=True) matrix
    # out_ref   : (nb, COUT, HW)    f32  NCHW(-flattened) output, lane-dense last dim
    nb = xcols_ref.shape[0]
    x = xcols_ref[...].reshape(nb * HFWF, KPAD)
    # dilated-conv sum as a single MXU matmul (K = 512), f32 accumulation
    acc = jnp.dot(x, w_ref[...], preferred_element_type=jnp.float32)      # (nb*HFWF, COUT)
    acc = acc + b_ref[...]
    # transpose to channel-major so the upsample output is lane-dense NCHW
    acc_t = jnp.transpose(acc.reshape(nb, HFWF, COUT), (0, 2, 1))          # (nb, COUT, HFWF)
    acc_t = acc_t.reshape(nb * COUT, HFWF).astype(mT_ref.dtype)
    # bilinear upsample: out[(n,c), hw] = sum_p acc_t[(n,c), p] * M^T[p, hw]
    out = jnp.dot(acc_t, mT_ref[...], preferred_element_type=jnp.float32)  # (nb*COUT, HW)
    out_ref[...] = out.reshape(nb, COUT, HW)


def decoder_and_upsample(xcols, wc, b, mT, nb):
    nsteps = N // nb
    return pl.pallas_call(
        decoder_kernel,
        out_shape=jax.ShapeDtypeStruct((N, COUT, HW), jnp.float32),
        grid_spec=pltpu.PrefetchScalarGridSpec(
            num_scalar_prefetch=0,
            grid=(nsteps,),
            in_specs=[
                pl.BlockSpec((nb, HFWF, KPAD), lambda i: (i, 0, 0)),
                pl.BlockSpec((KPAD, COUT), lambda i: (0, 0)),
                pl.BlockSpec((1, COUT), lambda i: (0, 0)),
                pl.BlockSpec((HFWF, HW), lambda i: (0, 0)),
            ],
            out_specs=pl.BlockSpec((nb, COUT, HW), lambda i: (i, 0, 0)),
        ),
        compiler_params=pltpu.CompilerParams(dimension_semantics=("parallel",)),
    )(xcols, wc, b, mT)


def batch_per_grid_step():
    # v7x has 2 TensorCores per chip -> keep a batch-parallel grid of 2.
    # v5e / v6e have a single TC -> merge the batch into one grid step.
    try:
        kind = jax.devices()[0].device_kind.lower().replace(" ", "")
        if "v7" in kind or "tpu7" in kind:
            return 1
    except Exception:
        pass
    return N


# ----------------------------- glue (plain JAX) ---------------------------------
def bilinear_matrix(out_size, in_size):
    # align_corners=True source coordinates: s = i * (in-1) / (out-1)
    if out_size == 1:
        s = np.zeros((1,), np.float64)
    else:
        s = np.arange(out_size, dtype=np.float64) * (in_size - 1) / (out_size - 1)
    p0 = np.clip(np.floor(s).astype(np.int64), 0, in_size - 1)
    p1 = np.clip(p0 + 1, 0, in_size - 1)
    frac = s - p0
    A = np.zeros((out_size, in_size), np.float64)
    A[np.arange(out_size), p0] += 1.0 - frac
    A[np.arange(out_size), p1] += frac
    return jnp.asarray(A, jnp.float32)


def im2col(feat):
    # feat: (N, HF, WF, C1) f32 -> (N, HFWF, KPAD) bf16, taps ordered (dilation, ky, kx, cin)
    xpad = jnp.pad(feat, ((0, 0), (PAD, PAD), (PAD, PAD), (0, 0)))
    cols = []
    for d in (D1, D2):
        for ky in range(3):
            for kx in range(3):
                oy = PAD + (ky - 1) * d
                ox = PAD + (kx - 1) * d
                cols.append(xpad[:, oy:oy + HF, ox:ox + WF, :])   # (N, HF, WF, C1)
    x = jnp.stack(cols, axis=3).reshape(N, HFWF, K)               # (N, HFWF, 18*C1)
    x = jnp.pad(x, ((0, 0), (0, 0), (0, KPAD - K)))
    return x.astype(jnp.bfloat16)


def combine_weights(w1, w2):
    # (dilation, ky, kx, cin) ordering matches im2col column ordering
    wc = jnp.stack([w1, w2], axis=0).reshape(K, COUT)
    wc = jnp.pad(wc, ((0, KPAD - K), (0, 0)))
    return wc.astype(jnp.bfloat16)


def encoder_stub(x_nchw, p1):
    # TODO(synk): the ResNet-50 `Encoder` source is not included in the module listing;
    # feat_1 is replaced by a deterministic stride-4 average-pool + 1x1 projection stub.
    x = jnp.transpose(x_nchw, (0, 2, 3, 1))                        # NHWC
    pooled = x.reshape(N, HF, STRIDE, WF, STRIDE, CIN_IMG).mean(axis=(2, 4))
    return jnp.einsum('nhwc,cd->nhwd', pooled, p1)                 # stand-in feat_1


if __name__ == "__main__":
    key = jax.random.PRNGKey(0)
    k = jax.random.split(key, 6)
    x  = jax.random.normal(k[0], (N, CIN_IMG, H_IMG, W_IMG), jnp.float32)
    p1 = jax.random.normal(k[1], (CIN_IMG, C1), jnp.float32) * 0.5
    # Classifier_Module inits conv weights with normal(0, 0.01)
    w1 = jax.random.normal(k[2], (3, 3, C1, COUT), jnp.float32) * 0.01
    w2 = jax.random.normal(k[3], (3, 3, C1, COUT), jnp.float32) * 0.01
    b1 = jax.random.normal(k[4], (1, COUT), jnp.float32) * 0.01
    b2 = jax.random.normal(k[5], (1, COUT), jnp.float32) * 0.01

    feat1 = encoder_stub(x, p1)                                    # (N, HF, WF, C1)

    # kernel operands (bf16 MXU inputs, f32 bias/accumulation/output)
    xcols = im2col(feat1)                                          # (N, HFWF, KPAD) bf16
    wc    = combine_weights(w1, w2)                                # (KPAD, COUT)    bf16
    bsum  = b1 + b2                                                # (1, COUT)       f32
    A_h = bilinear_matrix(H_IMG, HF)                               # (H, HF)
    A_w = bilinear_matrix(W_IMG, WF)                               # (W, WF)
    mT  = jnp.einsum('hp,wq->pqhw', A_h, A_w).reshape(HFWF, HW).astype(jnp.bfloat16)

    nb = batch_per_grid_step()
    out = decoder_and_upsample(xcols, wc, bsum, mT, nb)            # (N, COUT, H*W)
    out = out.reshape(N, COUT, H_IMG, W_IMG)                       # already NCHW
    out = jax.block_until_ready(out)

    # ---------------- reference (plain JAX, f32 math on the same bf16-rounded operands)
    feat_b = feat1.astype(jnp.bfloat16).astype(jnp.float32)
    w1_b = w1.astype(jnp.bfloat16).astype(jnp.float32)
    w2_b = w2.astype(jnp.bfloat16).astype(jnp.float32)

    def ref_conv(f, w, b, d):
        y = lax.conv_general_dilated(f, w, window_strides=(1, 1),
                                     padding=[(d, d), (d, d)], rhs_dilation=(d, d),
                                     dimension_numbers=('NHWC', 'HWIO', 'NHWC'),
                                     precision=lax.Precision.HIGHEST)
        return y + b.reshape(1, 1, 1, COUT)

    ref_feat = ref_conv(feat_b, w1_b, b1, D1) + ref_conv(feat_b, w2_b, b2, D2)
    mT_f32 = mT.astype(jnp.float32)
    ref_out = jnp.einsum('npc,pq->ncq', ref_feat.reshape(N, HFWF, COUT), mT_f32,
                         precision=lax.Precision.HIGHEST).reshape(N, COUT, H_IMG, W_IMG)

    np.testing.assert_allclose(np.asarray(out), np.asarray(ref_out), rtol=2e-2, atol=1e-3)

    print("KERNEL_OK")
</pallas_src>

<mosaic_0001>
module attributes {stable_mosaic.version = 11 : i64} {
  func.func @decoder_kernel(%arg0: i32, %arg1: memref<2x64x512xbf16, #tpu.memory_space<vmem>>, %arg2: memref<512x32xbf16, #tpu.memory_space<vmem>>, %arg3: memref<1x32xf32, #tpu.memory_space<vmem>>, %arg4: memref<64x1024xbf16, #tpu.memory_space<vmem>>, %arg5: memref<2x32x1024xf32, #tpu.memory_space<vmem>>) attributes {dimension_semantics = [#tpu.dimension_semantics<parallel>], iteration_bounds = array<i64: 1>, scalar_prefetch = 0 : i64, scratch_operands = 0 : i64, tpu.core_type = #tpu.core_type<tc>, window_params = [{transform_indices = @transform_0, window_bounds = array<i64: 2, 64, 512>}, {pipeline_mode = #tpu.pipeline_mode<synchronous>, transform_indices = @transform_1, window_bounds = array<i64: 512, 32>}, {pipeline_mode = #tpu.pipeline_mode<synchronous>, transform_indices = @transform_2, window_bounds = array<i64: 1, 32>}, {pipeline_mode = #tpu.pipeline_mode<synchronous>, transform_indices = @transform_3, window_bounds = array<i64: 64, 1024>}, {transform_indices = @transform_4, window_bounds = array<i64: 2, 32, 1024>}]} {
    %c0 = arith.constant 0 : index
    %c0_0 = arith.constant 0 : index
    %c0_1 = arith.constant 0 : index
    %0 = vector.load %arg1[%c0, %c0_0, %c0_1] : memref<2x64x512xbf16, #tpu.memory_space<vmem>>, vector<2x64x512xbf16>
    %1 = vector.shape_cast %0 : vector<2x64x512xbf16> to vector<128x512xbf16>
    %c0_2 = arith.constant 0 : index
    %c0_3 = arith.constant 0 : index
    %2 = vector.load %arg2[%c0_2, %c0_3] : memref<512x32xbf16, #tpu.memory_space<vmem>>, vector<512x32xbf16>
    %cst = arith.constant dense<0.000000e+00> : vector<128x32xf32>
    %3 = tpu.matmul %1, %2, %cst {dimension_numbers = #tpu.dot_dimension_numbers<[1], [0], [0], [1], [0, 0, 1, 1], [], []>} : vector<128x512xbf16>, vector<512x32xbf16>, vector<128x32xf32> -> vector<128x32xf32>
    %c0_4 = arith.constant 0 : index
    %c0_5 = arith.constant 0 : index
    %4 = vector.load %arg3[%c0_4, %c0_5] : memref<1x32xf32, #tpu.memory_space<vmem>>, vector<1x32xf32>
    %5 = vector.broadcast %4 : vector<1x32xf32> to vector<128x32xf32>
    %6 = arith.addf %3, %5 : vector<128x32xf32>
    %7 = vector.shape_cast %6 : vector<128x32xf32> to vector<2x64x32xf32>
    %8 = tpu.transpose %7, [0, 2, 1] : vector<2x64x32xf32> -> vector<2x32x64xf32>
    %9 = vector.shape_cast %8 : vector<2x32x64xf32> to vector<64x64xf32>
    %10 = arith.truncf %9 : vector<64x64xf32> to vector<64x64xbf16>
    %c0_6 = arith.constant 0 : index
    %c0_7 = arith.constant 0 : index
    %11 = vector.load %arg4[%c0_6, %c0_7] : memref<64x1024xbf16, #tpu.memory_space<vmem>>, vector<64x1024xbf16>
    %cst_8 = arith.constant dense<0.000000e+00> : vector<64x1024xf32>
    %12 = tpu.matmul %10, %11, %cst_8 {dimension_numbers = #tpu.dot_dimension_numbers<[1], [0], [0], [1], [0, 0, 1, 1], [], []>} : vector<64x64xbf16>, vector<64x1024xbf16>, vector<64x1024xf32> -> vector<64x1024xf32>
    %13 = vector.shape_cast %12 : vector<64x1024xf32> to vector<2x32x1024xf32>
    %c0_9 = arith.constant 0 : index
    %c0_10 = arith.constant 0 : index
    %c0_11 = arith.constant 0 : index
    %14 = vector.load %arg5[%c0_9, %c0_10, %c0_11] : memref<2x32x1024xf32, #tpu.memory_space<vmem>>, vector<2x32x1024xf32>
    tpu.vector_store %arg5[%c0_9, %c0_10, %c0_11], %13 {strides = array<i32>} : memref<2x32x1024xf32, #tpu.memory_space<vmem>>, vector<2x32x1024xf32>,
    return
  }
  func.func @transform_0(%arg0: i32) -> (i32, i32, i32) {
    %c0_i32 = arith.constant 0 : i32
    %c0_i32_0 = arith.constant 0 : i32
    %c0_i32_1 = arith.constant 0 : i32
    return %arg0, %c0_i32, %c0_i32_0 : i32, i32, i32
  }
  func.func @transform_1(%arg0: i32) -> (i32, i32) {
    %c0_i32 = arith.constant 0 : i32
    %c0_i32_0 = arith.constant 0 : i32
    %c0_i32_1 = arith.constant 0 : i32
    return %c0_i32, %c0_i32_0 : i32, i32
  }
  func.func @transform_2(%arg0: i32) -> (i32, i32) {
    %c0_i32 = arith.constant 0 : i32
    %c0_i32_0 = arith.constant 0 : i32
    %c0_i32_1 = arith.constant 0 : i32
    return %c0_i32, %c0_i32_0 : i32, i32
  }
  func.func @transform_3(%arg0: i32) -> (i32, i32) {
    %c0_i32 = arith.constant 0 : i32
    %c0_i32_0 = arith.constant 0 : i32
    %c0_i32_1 = arith.constant 0 : i32
    return %c0_i32, %c0_i32_0 : i32, i32
  }
  func.func @transform_4(%arg0: i32) -> (i32, i32, i32) {
    %c0_i32 = arith.constant 0 : i32
    %c0_i32_0 = arith.constant 0 : i32
    %c0_i32_1 = arith.constant 0 : i32
    return %arg0, %c0_i32, %c0_i32_0 : i32, i32, i32
  }
}

</mosaic_0001>

<bundles_post_ra>
// kernel: tpu_custom_call.1
= control target key start
LH: loop header
LB: loop body
LE: loop exit
PB: predicated region body
PF: predicated region fallthrough
CT: control target
= control target key end

     0   :  { %9 = vsyncpa [#allocation3], 0  ;;  %s2006_s0 = inlined_call_operand.vmem [shape: bf16[2,64,512], index: 0, kind: input, shape index: {}]   ;;  %s2007_s1 = inlined_call_operand.vmem [shape: bf16[512,32], index: 1, kind: input, shape index: {}]   ;;  %s2008_s2 = inlined_call_operand.vmem [shape: f32[1,32], index: 2, kind: input, shape index: {}]   ;;  %s2009_s3 = inlined_call_operand.hbm [shape: bf16[64,1024], index: 3, kind: input, shape index: {}]   ;;  %s2010_s4 = inlined_call_operand.hbm [shape: f32[2,32,1024], index: 4, kind: output, shape index: {}]  }
   0x1   :  { %10 = vsyncpa [#allocation4], 0  ;;  %s1701_s15 = smov [#allocation2]  }
   0x2   :  { %s22_s16 = sshll.u32 %s1701_s15, 4  ;;  %s23_s16 = int_to_ptr.vmem [resolvable:$true] %s22_s16 }
   0x3   :  { %s1665_s17 = scalar_lea.vmem %s23_s16, 4096  ;;  %p1670_p1 = scmp.lt.s32.totalorder %s23_s16, %s23_s16 }
   0x4   :  { %p1666_p0 = scmp.ne.s32.totalorder %s23_s16, %s1665_s17  ;;  %p1671_p2 = scmp.lt.s32.totalorder %s1665_s17, %s1665_s17 }
   0x6   :  { %p1672_p3 = por %p1671_p2, %p1670_p1 }
   0x8   :  { %p1673_p4 = pnand %p1672_p3, %p1666_p0 }
   0xa   :  { %1676 = shalt.err (!%p1673_p4)
}
   0xb   :  { %s1702_s18 = smov 512   ;;  %s1703_s19 = smov 32  }
   0xc   :  { %28 = dma.hbm_to_vmem [thread:$0]  %s2009_s3, 4096, %s23_s16, [#allocation3], %s1702_s18, %s1702_s18, %s1703_s19  }
   0xd   :  { %1697 = dma.done.wait [#allocation3], 4096  }
   0xe   :  { %1698 = vsyncadd [#allocation3], 4294963200  ;;  %v1577_v0 = vld [vmem:[%s2007_s1 + $0x78] sm:$0xff]   ;;  %v1581_v4 = vld [vmem:[%s2007_s1 + $0x70] sm:$0xff]   ;;  %vm942_vm0 = vcmask 523264  }
   0xf   :  { %v1578_v1 = vld [vmem:[%s2007_s1 + $0xf8] sm:$0xff]   ;;  %1441 = vmatprep.subr.bf16.mxu0 %v1577_v0  ;;  %v1582_v5 = vld [vmem:[%s2007_s1 + $0xf0] sm:$0xff]   ;;  %v1585_v8 = vld [vmem:[%s2007_s1 + $0x68] sm:$0xff]  }
  0x10   :  { %v1579_v2 = vld [vmem:[%s2007_s1 + $0x38] sm:$0xff]   ;;  %1505 = vmatprep.subr.bf16.mxu1 %v1578_v1  ;;  %v1583_v6 = vld [vmem:[%s2007_s1 + $0x30] sm:$0xff]   ;;  %v1586_v9 = vld [vmem:[%s2007_s1 + $0xe8] sm:$0xff]  }
  0x11   :  { %v1580_v3 = vld [vmem:[%s2007_s1 + $0xb8] sm:$0xff]   ;;  %1442 = vmatpush3.bf16.msra.mxu0 %v1579_v2  ;;  %v1584_v7 = vld [vmem:[%s2007_s1 + $0xb0] sm:$0xff]   ;;  %v1587_v10 = vld [vmem:[%s2007_s1 + $0x28] sm:$0xff]  }
  0x12   :  { %1506 = vmatpush3.bf16.msra.mxu1 %v1580_v3  ;;  %1443 = vmatprep.subr.bf16.mxu0 %v1581_v4  ;;  %v1588_v11 = vld [vmem:[%s2007_s1 + $0xa8] sm:$0xff]   ;;  %v1589_v12 = vld [vmem:[%s2007_s1 + $0x60] sm:$0xff]   ;;  %v1593_v16 = vld [vmem:[%s2007_s1 + $0x58] sm:$0xff]  }
  0x13   :  { %1507 = vmatprep.subr.bf16.mxu1 %v1582_v5  ;;  %v1590_v13 = vld [vmem:[%s2007_s1 + $0xe0] sm:$0xff]   ;;  %v1594_v17 = vld [vmem:[%s2007_s1 + $0xd8] sm:$0xff]   ;;  %v1597_v20 = vld [vmem:[%s2007_s1 + $0x50] sm:$0xff]  }
  0x14   :  { %v1591_v14 = vld [vmem:[%s2007_s1 + $0x20] sm:$0xff]   ;;  %v1595_v18 = vld [vmem:[%s2007_s1 + $0x18] sm:$0xff]   ;;  %v1598_v21 = vld [vmem:[%s2007_s1 + $0xd0] sm:$0xff]  }
  0x15   :  { %1444 = vmatpush3.bf16.msra.mxu0 %v1583_v6  ;;  %v1592_v15 = vld [vmem:[%s2007_s1 + $0xa0] sm:$0xff]   ;;  %v1596_v19 = vld [vmem:[%s2007_s1 + $0x98] sm:$0xff]   ;;  %v1599_v22 = vld [vmem:[%s2007_s1 + $0x10] sm:$0xff]  }
  0x16   :  { %1508 = vmatpush3.bf16.msra.mxu1 %v1584_v7  ;;  %1445 = vmatprep.subr.bf16.mxu0 %v1585_v8  ;;  %v1600_v23 = vld [vmem:[%s2007_s1 + $0x90] sm:$0xff]   ;;  %v1601_v24 = vld [vmem:[%s2007_s1 + $0x48] sm:$0xff]   ;;  %v1605_v28 = vld [vmem:[%s2007_s1 + $0x40] sm:$0xff]  }
  0x17   :  { %1509 = vmatprep.subr.bf16.mxu1 %v1586_v9  ;;  %v1602_v25 = vld [vmem:[%s2007_s1 + $0xc8] sm:$0xff]   ;;  %v1606_v29 = vld [vmem:[%s2007_s1 + $0xc0] sm:$0xff]  }
  0x18   :  { %v1603_v26 = vld [vmem:[%s2007_s1 + $0x8] sm:$0xff]   ;;  %v1607_v30 = vld [vmem:[%s2007_s1] sm:$0xff]  }
  0x19   :  { %1446 = vmatpush3.bf16.msra.mxu0 %v1587_v10  ;;  %v1604_v27 = vld [vmem:[%s2007_s1 + $0x88] sm:$0xff]   ;;  %v1608_v31 = vld [vmem:[%s2007_s1 + $0x80] sm:$0xff]  }
  0x1a   :  { %1510 = vmatpush3.bf16.msra.mxu1 %v1588_v11  ;;  %1447 = vmatprep.subr.bf16.mxu0 %v1589_v12  ;;  %v1609_v32 = vld [vmem:[%s2006_s0] ss:$16 sps:$4 sm:$0xff]   ;;  %v1611_v33 = vld [vmem:[%s2006_s0 + $0x4] ss:$16 sps:$4 sm:$0xff]   ;;  %v1612_v34 = vld [vmem:[%s2006_s0 + $0x8] ss:$16 sps:$4 sm:$0xff]  }
  0x1b   :  { %1511 = vmatprep.subr.bf16.mxu1 %v1590_v13  ;;  %v1614_v35 = vld [vmem:[%s2006_s0 + $0xc] ss:$16 sps:$4 sm:$0xff]   ;;  %520 = vmatprep.mubr.bf16.mxu0 %v1611_v33  ;;  %v1615_v36 = vld [vmem:[%s2006_s0 + $0x24] ss:$16 sps:$4 sm:$0xff]   ;;  %v1619_v38 = vld [vmem:[%s2006_s0 + $0x20] ss:$16 sps:$4 sm:$0xff]  }
  0x1c   :  { %617 = vmatprep.mubr.bf16.mxu1 %v1614_v35  ;;  %v1617_v37 = vld [vmem:[%s2006_s0 + $0x2c] ss:$16 sps:$4 sm:$0xff]   ;;  %v1620_v39 = vld [vmem:[%s2006_s0 + $0x28] ss:$16 sps:$4 sm:$0xff]   ;;  %v1621_v40 = vld [vmem:[%s2006_s0 + $0x44] ss:$16 sps:$4 sm:$0xff]  }
  0x1d   :  { %1448 = vmatpush3.bf16.msra.mxu0 %v1591_v14  ;;  %v1623_v41 = vld [vmem:[%s2006_s0 + $0x4c] ss:$16 sps:$4 sm:$0xff]   ;;  %v1625_v42 = vld [vmem:[%s2006_s0 + $0x40] ss:$16 sps:$4 sm:$0xff]   ;;  %v1626_v43 = vld [vmem:[%s2006_s0 + $0x48] ss:$16 sps:$4 sm:$0xff]  }
  0x1e   :  { %1512 = vmatpush3.bf16.msra.mxu1 %v1592_v15  ;;  %1449 = vmatprep.subr.bf16.mxu0 %v1593_v16  ;;  %v1627_v44 = vld [vmem:[%s2006_s0 + $0x64] ss:$16 sps:$4 sm:$0xff]   ;;  %v1629_v45 = vld [vmem:[%s2006_s0 + $0x6c] ss:$16 sps:$4 sm:$0xff]   ;;  %v1631_v46 = vld [vmem:[%s2006_s0 + $0x60] ss:$16 sps:$4 sm:$0xff]  }
  0x1f   :  { %1513 = vmatprep.subr.bf16.mxu1 %v1594_v17  ;;  %v1632_v47 = vld [vmem:[%s2006_s0 + $0x68] ss:$16 sps:$4 sm:$0xff]   ;;  %v1633_v48 = vld [vmem:[%s2006_s0 + $0x84] ss:$16 sps:$4 sm:$0xff]   ;;  %v1635_v49 = vld [vmem:[%s2006_s0 + $0x8c] ss:$16 sps:$4 sm:$0xff]  }
  0x20   :  { %v1637_v50 = vld [vmem:[%s2006_s0 + $0x80] ss:$16 sps:$4 sm:$0xff]   ;;  %v1638_v51 = vld [vmem:[%s2006_s0 + $0x88] ss:$16 sps:$4 sm:$0xff]   ;;  %v1639_v52 = vld [vmem:[%s2006_s0 + $0xa4] ss:$16 sps:$4 sm:$0xff]  }
  0x21   :  { %1450 = vmatpush3.bf16.msra.mxu0 %v1595_v18  ;;  %v1641_v53 = vld [vmem:[%s2006_s0 + $0xac] ss:$16 sps:$4 sm:$0xff]   ;;  %v1643_v54 = vld [vmem:[%s2006_s0 + $0xa0] ss:$16 sps:$4 sm:$0xff]   ;;  %v1644_v55 = vld [vmem:[%s2006_s0 + $0xa8] ss:$16 sps:$4 sm:$0xff]  }
  0x22   :  { %1514 = vmatpush3.bf16.msra.mxu1 %v1596_v19  ;;  %1451 = vmatprep.subr.bf16.mxu0 %v1597_v20  ;;  %v1645_v56 = vld [vmem:[%s2006_s0 + $0xc4] ss:$16 sps:$4 sm:$0xff]   ;;  %v1647_v57 = vld [vmem:[%s2006_s0 + $0xcc] ss:$16 sps:$4 sm:$0xff]   ;;  %v1649_v58 = vld [vmem:[%s2006_s0 + $0xc0] ss:$16 sps:$4 sm:$0xff]  }
  0x23   :  { %1515 = vmatprep.subr.bf16.mxu1 %v1598_v21  ;;  %v1650_v59 = vld [vmem:[%s2006_s0 + $0xc8] ss:$16 sps:$4 sm:$0xff]   ;;  %v1651_v60 = vld [vmem:[%s2006_s0 + $0xe4] ss:$16 sps:$4 sm:$0xff]   ;;  %v1653_v61 = vld [vmem:[%s2006_s0 + $0xec] ss:$16 sps:$4 sm:$0xff]  }
  0x24   :  { %v1655_v62 = vld [vmem:[%s2006_s0 + $0xe0] ss:$16 sps:$4 sm:$0xff]   ;;  %v1656_v63 = vld [vmem:[%s2006_s0 + $0xe8] ss:$16 sps:$4 sm:$0xff]  }
  0x25   :  { %1452 = vmatpush3.bf16.msra.mxu0 %v1599_v22  ;;  %v774_v0 = vld [vmem:[#allocation2 + $0xc0] sm:$0xff]  ;;  %v775_v2 = vld [vmem:[#allocation2 + $0xc8] sm:$0xff] }
  0x26   :  { %1516 = vmatpush3.bf16.msra.mxu1 %v1600_v23  ;;  %1453 = vmatprep.subr.bf16.mxu0 %v1601_v24  ;;  %v778_v1 = vld [vmem:[#allocation2 + $0xe0] sm:$0xff]  ;;  %v779_v5 = vld [vmem:[#allocation2 + $0xe8] sm:$0xff] }
  0x27   :  { %1517 = vmatprep.subr.bf16.mxu1 %v1602_v25  ;;  %v1417_v3 = vcombine.low %v774_v0, %v778_v1  ;;  %v1418_v4 = vcombine.high %v774_v0, %v778_v1  ;;  %v766_v6 = vld [vmem:[#allocation2 + $0x80] sm:$0xff]  ;;  %v1419_v8 = vcombine.low %v775_v2, %v779_v5  ;;  %v1420_v9 = vcombine.high %v775_v2, %v779_v5  ;;  %v767_v11 = vld [vmem:[#allocation2 + $0x88] sm:$0xff] }
  0x28   :  { %v770_v7 = vld [vmem:[#allocation2 + $0xa0] sm:$0xff]  ;;  %v771_v12 = vld [vmem:[#allocation2 + $0xa8] sm:$0xff] }
  0x29   :  { %1454 = vmatpush3.bf16.msra.mxu0 %v1603_v26  ;;  %v1410_v10 = vcombine.high %v766_v6, %v770_v7  ;;  %v758_v13 = vld [vmem:[#allocation2 + $0x40] sm:$0xff]  ;;  %v1412_v14 = vcombine.high %v767_v11, %v771_v12  ;;  %v759_v16 = vld [vmem:[#allocation2 + $0x48] sm:$0xff]  ;;  %v1409_v18 = vcombine.low %v766_v6, %v770_v7  ;;  %v1411_v19 = vcombine.low %v767_v11, %v771_v12 }
  0x2a   :  { %1518 = vmatpush3.bf16.msra.mxu1 %v1604_v27  ;;  %1455 = vmatprep.subr.bf16.mxu0 %v1605_v28  ;;  %v762_v15 = vld [vmem:[#allocation2 + $0x60] sm:$0xff]  ;;  %v763_v17 = vld [vmem:[#allocation2 + $0x68] sm:$0xff] }
  0x2b   :  { %1519 = vmatprep.subr.bf16.mxu1 %v1606_v29  ;;  %v1402_v20 = vcombine.high %v758_v13, %v762_v15  ;;  %v1404_v21 = vcombine.high %v759_v16, %v763_v17  ;;  %v750_v22 = vld [vmem:[#allocation2] sm:$0xff]  ;;  %v751_v24 = vld [vmem:[#allocation2 + $0x8] sm:$0xff]  ;;  %v1401_v26 = vcombine.low %v758_v13, %v762_v15  ;;  %v1403_v27 = vcombine.low %v759_v16, %v763_v17  ;;  %v1950_v16 = vld [vmem:[#allocation2 + $0xf8] sm:$0xff] }
  0x2c   :  { %v754_v23 = vld [vmem:[#allocation2 + $0x20] sm:$0xff]  ;;  %v755_v25 = vld [vmem:[#allocation2 + $0x28] sm:$0xff] }
  0x2d   :  { %1456 = vmatpush3.bf16.msra.mxu0 %v1607_v30  ;;  %v1394_v28 = vcombine.high %v750_v22, %v754_v23  ;;  %v1396_v29 = vcombine.high %v751_v24, %v755_v25  ;;  %v1393_v30 = vcombine.low %v750_v22, %v754_v23  ;;  %v1931_v35 = vld [vmem:[%s2008_s2] ss:$0 sm:$0xff]  ;;  %s1705_s2 = smov [#allocation5]  }
  0x2e   :  { %1520 = vmatpush3.bf16.msra.mxu1 %v1608_v31  ;;  %963 = vmatprep.subr.bf16.mxu0 %v1418_v4  ;;  %v1395_v31 = vcombine.low %v751_v24, %v755_v25  ;;  %s1316_s13 = sshll.u32 %s1705_s2, 4  ;;  %s1317_s13 = int_to_ptr.vmem [resolvable:$true] %s1316_s13 }
  0x2f   :  { %1036 = vmatprep.subr.bf16.mxu1 %v1420_v9  ;;  %v1941_v9 = vld [vmem:[#allocation2 + $0xf0] sm:$0xff]  ;;  %s1677_s14 = scalar_lea.vmem %s1317_s13, 8192  ;;  %p1682_p6 = scmp.lt.s32.totalorder %s1317_s13, %s1317_s13 }
  0x30   :  { %521 = vmatmul.mubr.bf16.vlgmr.msra.gmra.mxu0 %v1609_v32  ;;  %p1678_p5 = scmp.ne.s32.totalorder %s1317_s13, %s1677_s14  ;;  %p1683_p7 = scmp.lt.s32.totalorder %s1677_s14, %s1677_s14 }
  0x31   :  { %618 = vmatmul.mubr.bf16.vlgmr.msra.gmra.mxu1 %v1612_v34  ;;  %528 = vmatprep.mubr.bf16.mxu0 %v1615_v36 }
  0x32   :  { %625 = vmatprep.mubr.bf16.mxu1 %v1617_v37  ;;  %964 = vmatpush1.bf16.msra.mxu0 %v1417_v3  ;;  %p1684_p8 = por %p1683_p7, %p1682_p6 }
  0x33   :  { %1037 = vmatpush1.bf16.msra.mxu1 %v1419_v8  ;;  %965 = vmatprep.subr.bf16.mxu0 %v1410_v10  ;;  %v1939_v8 = vld [vmem:[#allocation2 + $0xd0] sm:$0xff]  ;;  %v1943_v10 = vld [vmem:[#allocation2 + $0xd8] sm:$0xff] }
  0x34   :  { %1038 = vmatprep.subr.bf16.mxu1 %v1412_v14  ;;  %v1421_v14 = vcombine.low %v1939_v8, %v1941_v9  ;;  %v1422_v15 = vcombine.high %v1939_v8, %v1941_v9  ;;  %p1685_p9 = pnand %p1684_p8, %p1678_p5 }
  0x36   :  { %966 = vmatpush1.bf16.msra.mxu0 %v1409_v18  ;;  %v1423_v18 = vcombine.low %v1943_v10, %v1950_v16 }
  0x37   :  { %1039 = vmatpush1.bf16.msra.mxu1 %v1411_v19  ;;  %967 = vmatprep.subr.bf16.mxu0 %v1402_v20  ;;  %v1424_v19 = vcombine.high %v1943_v10, %v1950_v16 }
  0x38   :  { %529 = vmatmul.mubr.bf16.gmra.mxu0 %v1619_v38  ;;  %1040 = vmatprep.subr.bf16.mxu1 %v1404_v21 }
  0x39   :  { %626 = vmatmul.mubr.bf16.gmra.mxu1 %v1620_v39  ;;  %536 = vmatprep.mubr.bf16.mxu0 %v1621_v40 }
  0x3a   :  { %633 = vmatprep.mubr.bf16.mxu1 %v1623_v41  ;;  %968 = vmatpush1.bf16.msra.mxu0 %v1401_v26 }
  0x3b   :  { %1041 = vmatpush1.bf16.msra.mxu1 %v1403_v27  ;;  %969 = vmatprep.subr.bf16.mxu0 %v1394_v28 }
  0x3c   :  { %1042 = vmatprep.subr.bf16.mxu1 %v1396_v29 }
  0x3e   :  { %970 = vmatpush1.bf16.msra.mxu0 %v1393_v30 }
  0x3f   :  { %1043 = vmatpush1.bf16.msra.mxu1 %v1395_v31  ;;  %1109 = vmatprep.subr.bf16.mxu0 %v1422_v15 }
  0x40   :  { %537 = vmatmul.mubr.bf16.gmra.mxu0 %v1625_v42  ;;  %1182 = vmatprep.subr.bf16.mxu1 %v1424_v19 }
  0x41   :  { %634 = vmatmul.mubr.bf16.gmra.mxu1 %v1626_v43  ;;  %544 = vmatprep.mubr.bf16.mxu0 %v1627_v44 }
  0x42   :  { %641 = vmatprep.mubr.bf16.mxu1 %v1629_v45 }
  0x48   :  { %545 = vmatmul.mubr.bf16.gmra.mxu0 %v1631_v46 }
  0x49   :  { %642 = vmatmul.mubr.bf16.gmra.mxu1 %v1632_v47  ;;  %552 = vmatprep.mubr.bf16.mxu0 %v1633_v48 }
  0x4a   :  { %649 = vmatprep.mubr.bf16.mxu1 %v1635_v49 }
  0x50   :  { %553 = vmatmul.mubr.bf16.gmra.mxu0 %v1637_v50 }
  0x51   :  { %650 = vmatmul.mubr.bf16.gmra.mxu1 %v1638_v51  ;;  %560 = vmatprep.mubr.bf16.mxu0 %v1639_v52 }
  0x52   :  { %657 = vmatprep.mubr.bf16.mxu1 %v1641_v53 }
  0x58   :  { %561 = vmatmul.mubr.bf16.gmra.mxu0 %v1643_v54  ;;  %v1704_v54 = vmov 0  }
  0x59   :  { %658 = vmatmul.mubr.bf16.gmra.mxu1 %v1644_v55  ;;  %568 = vmatprep.mubr.bf16.mxu0 %v1645_v56 }
  0x5a   :  { %665 = vmatprep.mubr.bf16.mxu1 %v1647_v57 }
  0x60   :  { %569 = vmatmul.mubr.bf16.gmra.mxu0 %v1649_v58 }
  0x61   :  { %666 = vmatmul.mubr.bf16.gmra.mxu1 %v1650_v59  ;;  %576 = vmatprep.mubr.bf16.mxu0 %v1651_v60 }
  0x62   :  { %673 = vmatprep.mubr.bf16.mxu1 %v1653_v61 }
  0x68   :  { %577 = vmatmul.mubr.bf16.gmra.mxu0 %v1655_v62 }
  0x69   :  { %674 = vmatmul.mubr.bf16.gmra.mxu1 %v1656_v63  ;;  %987 = vmatprep.mubr.bf16.mxu0 %v1704_v54 }
  0x6a   :  { %1060 = vmatprep.mubr.bf16.mxu1 %v1704_v54 }
  0xf0   :  { %v1457_v32 = vpop.f32.mrf.mxu0 }
  0xf1   :  { %v1521_v33 = vpop.f32.mrf.mxu1 }
  0xf2   :  { %v1458_v34 = vpop.f32.mrf.mxu0 }
  0xf3   :  { %v1459_v36 = vadd.f32 %v1458_v34, %v1457_v32  ;;  %v1522_v37 = vpop.f32.mrf.mxu1 }
  0xf4   :  { %v1460_v38 = vpop.f32.mrf.mxu0  ;;  %v1523_v39 = vadd.f32 %v1522_v37, %v1521_v33 }
  0xf5   :  { %v1524_v40 = vpop.f32.mrf.mxu1  ;;  %v523_v41 = vadd.f32 %v1459_v36, %v1931_v35 }
  0xf6   :  { %v1461_v42 = vpop.f32.mrf.mxu0 }
  0xf7   :  { %v1462_v43 = vadd.f32 %v1461_v42, %v1460_v38  ;;  %v1525_v44 = vpop.f32.mrf.mxu1  ;;  %v620_v45 = vadd.f32 %v1523_v39, %v523_v41 }
  0xf8   :  { %v1463_v46 = vpop.f32.mrf.mxu0  ;;  %v1526_v48 = vadd.f32 %v1525_v44, %v1524_v40 }
  0xf9   :  { %v526_v47 = vadd.f32 %v1462_v43, %v1931_v35  ;;  %v1527_v49 = vpop.f32.mrf.mxu1  ;;  %682 = vxpose.xlu0.b32.start [1/8] (short) (narrow) %v620_v45, 32 }
  0xfa   :  { %v1464_v50 = vpop.f32.mrf.mxu0 }
  0xfb   :  { %v1465_v51 = vadd.f32 %v1464_v50, %v1463_v46  ;;  %v1528_v52 = vpop.f32.mrf.mxu1  ;;  %v623_v53 = vadd.f32 %v1526_v48, %v526_v47 }
  0xfc   :  { %v1466_v55 = vpop.f32.mrf.mxu0  ;;  %v1529_v57 = vadd.f32 %v1528_v52, %v1527_v49 }
  0xfd   :  { %v531_v56 = vadd.f32 %v1465_v51, %v1931_v35  ;;  %v1530_v58 = vpop.f32.mrf.mxu1  ;;  %683 = vxpose.xlu0.b32.cont [2/8] (short) (narrow) %v623_v53, 32 }
  0xfe   :  { %v1467_v59 = vpop.f32.mrf.mxu0 }
  0xff   :  { %v1468_v60 = vadd.f32 %v1467_v59, %v1466_v55  ;;  %v1531_v61 = vpop.f32.mrf.mxu1  ;;  %v628_v62 = vadd.f32 %v1529_v57, %v531_v56 }
 0x100   :  { %v1469_v63 = vpop.f32.mrf.mxu0  ;;  %v1532_v1 = vadd.f32 %v1531_v61, %v1530_v58 }
 0x101   :  { %v534_v0 = vadd.f32 %v1468_v60, %v1931_v35  ;;  %v1533_v2 = vpop.f32.mrf.mxu1  ;;  %684 = vxpose.xlu0.b32.cont [3/8] (short) (narrow) %v628_v62, 32 }
 0x102   :  { %v1470_v3 = vpop.f32.mrf.mxu0 }
 0x103   :  { %v1471_v4 = vadd.f32 %v1470_v3, %v1469_v63  ;;  %v1534_v5 = vpop.f32.mrf.mxu1  ;;  %v631_v6 = vadd.f32 %v1532_v1, %v534_v0 }
 0x104   :  { %v1472_v7 = vpop.f32.mrf.mxu0  ;;  %v1535_v12 = vadd.f32 %v1534_v5, %v1533_v2 }
 0x105   :  { %v539_v11 = vadd.f32 %v1471_v4, %v1931_v35  ;;  %v1536_v13 = vpop.f32.mrf.mxu1  ;;  %685 = vxpose.xlu0.b32.cont [4/8] (short) (narrow) %v631_v6, 32 }
 0x106   :  { %v1473_v17 = vpop.f32.mrf.mxu0 }
 0x107   :  { %v1474_v20 = vadd.f32 %v1473_v17, %v1472_v7  ;;  %v1537_v21 = vpop.f32.mrf.mxu1  ;;  %v636_v22 = vadd.f32 %v1535_v12, %v539_v11 }
 0x108   :  { %v1475_v23 = vpop.f32.mrf.mxu0  ;;  %v1538_v25 = vadd.f32 %v1537_v21, %v1536_v13 }
 0x109   :  { %v542_v24 = vadd.f32 %v1474_v20, %v1931_v35  ;;  %v1539_v26 = vpop.f32.mrf.mxu1  ;;  %686 = vxpose.xlu0.b32.cont [5/8] (short) (narrow) %v636_v22, 32 }
 0x10a   :  { %v1476_v27 = vpop.f32.mrf.mxu0 }
 0x10b   :  { %v1477_v28 = vadd.f32 %v1476_v27, %v1475_v23  ;;  %v1540_v29 = vpop.f32.mrf.mxu1  ;;  %v639_v30 = vadd.f32 %v1538_v25, %v542_v24 }
 0x10c   :  { %v1478_v31 = vpop.f32.mrf.mxu0  ;;  %v1541_v33 = vadd.f32 %v1540_v29, %v1539_v26 }
 0x10d   :  { %v547_v32 = vadd.f32 %v1477_v28, %v1931_v35  ;;  %v1542_v34 = vpop.f32.mrf.mxu1  ;;  %687 = vxpose.xlu0.b32.cont [6/8] (short) (narrow) %v639_v30, 32 }
 0x10e   :  { %v1479_v36 = vpop.f32.mrf.mxu0 }
 0x10f   :  { %v1480_v37 = vadd.f32 %v1479_v36, %v1478_v31  ;;  %v1543_v38 = vpop.f32.mrf.mxu1  ;;  %v644_v39 = vadd.f32 %v1541_v33, %v547_v32 }
 0x110   :  { %v1481_v40 = vpop.f32.mrf.mxu0  ;;  %v1544_v42 = vadd.f32 %v1543_v38, %v1542_v34 }
 0x111   :  { %v550_v41 = vadd.f32 %v1480_v37, %v1931_v35  ;;  %v1545_v43 = vpop.f32.mrf.mxu1  ;;  %688 = vxpose.xlu0.b32.cont [7/8] (short) (narrow) %v644_v39, 32 }
 0x112   :  { %v1482_v44 = vpop.f32.mrf.mxu0 }
 0x113   :  { %v1483_v45 = vadd.f32 %v1482_v44, %v1481_v40  ;;  %v1546_v46 = vpop.f32.mrf.mxu1  ;;  %v647_v47 = vadd.f32 %v1544_v42, %v550_v41 }
 0x114   :  { %v1484_v48 = vpop.f32.mrf.mxu0  ;;  %v1547_v49 = vadd.f32 %v1546_v46, %v1545_v43 }
 0x115   :  { %v1548_v50 = vpop.f32.mrf.mxu1  ;;  %689 = vxpose.xlu0.b32.end [8/8] (short) (narrow) %v647_v47, 32  ;;  %v555_v51 = vadd.f32 %v1483_v45, %v1931_v35 }
 0x116   :  { %v1485_v52 = vpop.f32.mrf.mxu0 }
 0x117   :  { %v1486_v53 = vadd.f32 %v1485_v52, %v1484_v48  ;;  %v1549_v55 = vpop.f32.mrf.mxu1  ;;  %v652_v56 = vadd.f32 %v1547_v49, %v555_v51  ;;  %v768_v52 = vld [vmem:[#allocation2 + $0x90] sm:$0xff] }
 0x118   :  { %v1487_v57 = vpop.f32.mrf.mxu0  ;;  %v1550_v59 = vadd.f32 %v1549_v55, %v1548_v50  ;;  %v769_v55 = vld [vmem:[#allocation2 + $0x98] sm:$0xff] }
 0x119   :  { %v558_v58 = vadd.f32 %v1486_v53, %v1931_v35  ;;  %v1551_v60 = vpop.f32.mrf.mxu1  ;;  %714 = vxpose.xlu1.b32.start [1/8] (short) (narrow) %v652_v56, 32  ;;  %v772_v53 = vld [vmem:[#allocation2 + $0xb0] sm:$0xff]  ;;  %v773_v56 = vld [vmem:[#allocation2 + $0xb8] sm:$0xff] }
 0x11a   :  { %v1488_v61 = vpop.f32.mrf.mxu0 }
 0x11b   :  { %v1489_v62 = vadd.f32 %v1488_v61, %v1487_v57  ;;  %v1552_v63 = vpop.f32.mrf.mxu1  ;;  %v655_v0 = vadd.f32 %v1550_v59, %v558_v58  ;;  %v1414_v59 = vcombine.high %v768_v52, %v772_v53  ;;  %v760_v61 = vld [vmem:[#allocation2 + $0x50] sm:$0xff] }
 0x11c   :  { %v1490_v1 = vpop.f32.mrf.mxu0  ;;  %v1553_v3 = vadd.f32 %v1552_v63, %v1551_v60  ;;  %v1416_v60 = vcombine.high %v769_v55, %v773_v56  ;;  %v765_v63 = vld [vmem:[#allocation2 + $0x78] sm:$0xff] }
 0x11d   :  { %v563_v2 = vadd.f32 %v1489_v62, %v1931_v35  ;;  %v1554_v4 = vpop.f32.mrf.mxu1  ;;  %715 = vxpose.xlu1.b32.cont [2/8] (short) (narrow) %v655_v0, 32  ;;  %v761_v62 = vld [vmem:[#allocation2 + $0x58] sm:$0xff] }
 0x11e   :  { %v1491_v5 = vpop.f32.mrf.mxu0  ;;  %v1407_v9 = vcombine.low %v761_v62, %v765_v63 }
 0x11f   :  { %v1492_v6 = vadd.f32 %v1491_v5, %v1490_v1  ;;  %v1555_v7 = vpop.f32.mrf.mxu1  ;;  %v660_v11 = vadd.f32 %v1553_v3, %v563_v2  ;;  %v1413_v1 = vcombine.low %v768_v52, %v772_v53  ;;  %v1415_v2 = vcombine.low %v769_v55, %v773_v56  ;;  %v752_v5 = vld [vmem:[#allocation2 + $0x10] sm:$0xff] }
 0x120   :  { %v1493_v12 = vpop.f32.mrf.mxu0  ;;  %v1556_v15 = vadd.f32 %v1555_v7, %v1554_v4  ;;  %v1408_v4 = vcombine.high %v761_v62, %v765_v63  ;;  %v753_v7 = vld [vmem:[#allocation2 + $0x18] sm:$0xff] }
 0x121   :  { %v566_v13 = vadd.f32 %v1492_v6, %v1931_v35  ;;  %v1557_v17 = vpop.f32.mrf.mxu1  ;;  %716 = vxpose.xlu1.b32.cont [3/8] (short) (narrow) %v660_v11, 32  ;;  %v756_v6 = vld [vmem:[#allocation2 + $0x30] sm:$0xff]  ;;  %v757_v11 = vld [vmem:[#allocation2 + $0x38] sm:$0xff] }
 0x122   :  { %v1494_v19 = vpop.f32.mrf.mxu0  ;;  %v1398_v10 = vcombine.high %v752_v5, %v756_v6  ;;  %v1397_v16 = vcombine.low %v752_v5, %v756_v6 }
 0x123   :  { %v1495_v20 = vadd.f32 %v1494_v19, %v1493_v12  ;;  %v1558_v21 = vpop.f32.mrf.mxu1  ;;  %v663_v22 = vadd.f32 %v1556_v15, %v566_v13 }
 0x124   :  { %v1496_v23 = vpop.f32.mrf.mxu0  ;;  %v1559_v25 = vadd.f32 %v1558_v21, %v1557_v17 }
 0x125   :  { %v571_v24 = vadd.f32 %v1495_v20, %v1931_v35  ;;  %v1560_v26 = vpop.f32.mrf.mxu1  ;;  %717 = vxpose.xlu1.b32.cont [4/8] (short) (narrow) %v663_v22, 32 }
 0x126   :  { %v1497_v27 = vpop.f32.mrf.mxu0 }
 0x127   :  { %v1498_v28 = vadd.f32 %v1497_v27, %v1496_v23  ;;  %v1561_v29 = vpop.f32.mrf.mxu1  ;;  %v668_v30 = vadd.f32 %v1559_v25, %v571_v24 }
 0x128   :  { %v1499_v31 = vpop.f32.mrf.mxu0  ;;  %v1562_v33 = vadd.f32 %v1561_v29, %v1560_v26 }
 0x129   :  { %v574_v32 = vadd.f32 %v1498_v28, %v1931_v35  ;;  %v1563_v34 = vpop.f32.mrf.mxu1  ;;  %718 = vxpose.xlu1.b32.cont [5/8] (short) (narrow) %v668_v30, 32 }
 0x12a   :  { %v1500_v36 = vpop.f32.mrf.mxu0 }
 0x12b   :  { %v1501_v37 = vadd.f32 %v1500_v36, %v1499_v31  ;;  %v1564_v38 = vpop.f32.mrf.mxu1  ;;  %v671_v39 = vadd.f32 %v1562_v33, %v574_v32 }
 0x12c   :  { %v1502_v40 = vpop.f32.mrf.mxu0  ;;  %v1565_v42 = vadd.f32 %v1564_v38, %v1563_v34 }
 0x12d   :  { %v579_v41 = vadd.f32 %v1501_v37, %v1931_v35  ;;  %v1566_v43 = vpop.f32.mrf.mxu1  ;;  %719 = vxpose.xlu1.b32.cont [6/8] (short) (narrow) %v671_v39, 32 }
 0x12e   :  { %v1503_v44 = vpop.f32.mrf.mxu0 }
 0x12f   :  { %v1504_v45 = vadd.f32 %v1503_v44, %v1502_v40  ;;  %v1567_v46 = vpop.f32.mrf.mxu1  ;;  %v676_v47 = vadd.f32 %v1565_v42, %v579_v41 }
 0x130   :  { %v1568_v49 = vadd.f32 %v1567_v46, %v1566_v43 }
 0x131   :  { %v582_v48 = vadd.f32 %v1504_v45, %v1931_v35  ;;  %720 = vxpose.xlu1.b32.cont [7/8] (short) (narrow) %v676_v47, 32  ;;  %v764_v35 = vld [vmem:[#allocation2 + $0x70] sm:$0xff] }
 0x132   :  { %v1406_v3 = vcombine.high %v760_v61, %v764_v35  ;;  %v1405_v8 = vcombine.low %v760_v61, %v764_v35 }
 0x133   :  { %v679_v50 = vadd.f32 %v1568_v49, %v582_v48 }
 0x135   :  { %721 = vxpose.xlu1.b32.end [8/8] (short) (narrow) %v679_v50, 32 }
 0x175   :  { %v698_v51 = vpop.trf.xlu0 }
 0x179   :  { %v699_v57 = vpop.trf.xlu0 }
 0x17a   :  { %v746_v58 = vpack.c.bf16 %v699_v57, %v698_v51 }
 0x17c   :  { %1425 = vmatmul.mubr.msk.bf16.vlgmr.msra.gmra.mxu0 %vm942_vm0, %v746_v58  ;;  %1429 = vmatmul.mubr.msk.bf16.vlgmr.msra.gmra.mxu1 %vm942_vm0, %v746_v58 }
 0x17d   :  { %v700_v0 = vpop.trf.xlu0  ;;  %997 = vmatprep.mubr.bf16.mxu0 %v1704_v54  ;;  %1070 = vmatprep.mubr.bf16.mxu1 %v1704_v54 }
 0x17e   :  { %1110 = vmatpush1.bf16.msra.mxu0 %v1421_v14  ;;  %1183 = vmatpush1.bf16.msra.mxu1 %v1423_v18  ;;  %v1400_v14 = vcombine.high %v753_v7, %v757_v11  ;;  %v1399_v18 = vcombine.low %v753_v7, %v757_v11 }
 0x17f   :  { %1111 = vmatprep.subr.bf16.mxu0 %v1414_v59  ;;  %1184 = vmatprep.subr.bf16.mxu1 %v1416_v60 }
 0x181   :  { %v701_v12 = vpop.trf.xlu0 }
 0x182   :  { %v747_v13 = vpack.c.bf16 %v701_v12, %v700_v0  ;;  %1112 = vmatpush1.bf16.msra.mxu0 %v1413_v1  ;;  %1185 = vmatpush1.bf16.msra.mxu1 %v1415_v2 }
 0x183   :  { %1113 = vmatprep.subr.bf16.mxu0 %v1406_v3  ;;  %1186 = vmatprep.subr.bf16.mxu1 %v1408_v4 }
 0x184   :  { %1426 = vmatmul.mubr.msk.bf16.gmra.mxu0 %vm942_vm0, %v747_v13  ;;  %1430 = vmatmul.mubr.msk.bf16.gmra.mxu1 %vm942_vm0, %v747_v13 }
 0x185   :  { %1007 = vmatprep.mubr.bf16.mxu0 %v1704_v54  ;;  %1080 = vmatprep.mubr.bf16.mxu1 %v1704_v54 }
 0x186   :  { %1114 = vmatpush1.bf16.msra.mxu0 %v1405_v8  ;;  %1187 = vmatpush1.bf16.msra.mxu1 %v1407_v9 }
 0x187   :  { %1115 = vmatprep.subr.bf16.mxu0 %v1398_v10  ;;  %1188 = vmatprep.subr.bf16.mxu1 %v1400_v14 }
 0x18a   :  { %1116 = vmatpush1.bf16.msra.mxu0 %v1397_v16  ;;  %1189 = vmatpush1.bf16.msra.mxu1 %v1399_v18 }
 0x195   :  { %v730_v15 = vpop.trf.xlu1 }
 0x199   :  { %v731_v17 = vpop.trf.xlu1 }
 0x19a   :  { %v748_v19 = vpack.c.bf16 %v731_v17, %v730_v15 }
 0x19c   :  { %1427 = vmatmul.mubr.msk.bf16.gmra.mxu0 %vm942_vm0, %v748_v19  ;;  %1431 = vmatmul.mubr.msk.bf16.gmra.mxu1 %vm942_vm0, %v748_v19 }
 0x19d   :  { %v732_v20 = vpop.trf.xlu1  ;;  %1017 = vmatprep.mubr.bf16.mxu0 %v1704_v54  ;;  %1090 = vmatprep.mubr.bf16.mxu1 %v1704_v54 }
 0x1a1   :  { %v733_v21 = vpop.trf.xlu1 }
 0x1a2   :  { %v749_v22 = vpack.c.bf16 %v733_v21, %v732_v20 }
 0x1a4   :  { %1428 = vmatmul.mubr.msk.bf16.gmra.mxu0 %vm942_vm0, %v749_v22  ;;  %1432 = vmatmul.mubr.msk.bf16.gmra.mxu1 %vm942_vm0, %v749_v22 }
 0x1a5   :  { %1133 = vmatprep.mubr.bf16.mxu0 %v1704_v54  ;;  %1206 = vmatprep.mubr.bf16.mxu1 %v1704_v54 }
 0x1ac   :  { %1433 = vmatmul.mubr.msk.bf16.vlgmr.msra.gmra.mxu0 %vm942_vm0, %v746_v58  ;;  %1437 = vmatmul.mubr.msk.bf16.vlgmr.msra.gmra.mxu1 %vm942_vm0, %v746_v58 }
 0x1ad   :  { %1143 = vmatprep.mubr.bf16.mxu0 %v1704_v54  ;;  %1216 = vmatprep.mubr.bf16.mxu1 %v1704_v54 }
 0x1b4   :  { %1434 = vmatmul.mubr.msk.bf16.gmra.mxu0 %vm942_vm0, %v747_v13  ;;  %1438 = vmatmul.mubr.msk.bf16.gmra.mxu1 %vm942_vm0, %v747_v13 }
 0x1b5   :  { %1153 = vmatprep.mubr.bf16.mxu0 %v1704_v54  ;;  %1226 = vmatprep.mubr.bf16.mxu1 %v1704_v54 }
 0x1bc   :  { %1435 = vmatmul.mubr.msk.bf16.gmra.mxu0 %vm942_vm0, %v748_v19  ;;  %1439 = vmatmul.mubr.msk.bf16.gmra.mxu1 %vm942_vm0, %v748_v19 }
 0x1bd   :  { %1163 = vmatprep.mubr.bf16.mxu0 %v1704_v54  ;;  %1236 = vmatprep.mubr.bf16.mxu1 %v1704_v54 }
 0x1c4   :  { %1436 = vmatmul.mubr.msk.bf16.gmra.mxu0 %vm942_vm0, %v749_v22  ;;  %1440 = vmatmul.mubr.msk.bf16.gmra.mxu1 %vm942_vm0, %v749_v22 }
 0x23c   :  { %v989_v23 = vpop.f32.mrf.mxu0  ;;  %v1062_v24 = vpop.f32.mrf.mxu1 }
 0x23d   :  { %1247 = vst [vmem:[#allocation5] sm:$0xff] %v989_v23  ;;  %1249 = vst [vmem:[#allocation5 + $0x10] sm:$0xff] %v1062_v24 }
 0x23e   :  { %v991_v25 = vpop.f32.mrf.mxu0  ;;  %v1064_v26 = vpop.f32.mrf.mxu1 }
 0x23f   :  { %1248 = vst [vmem:[#allocation5 + $0x8] sm:$0xff] %v991_v25  ;;  %1250 = vst [vmem:[#allocation5 + $0x18] sm:$0xff] %v1064_v26 }
 0x240   :  { %v993_v27 = vpop.f32.mrf.mxu0  ;;  %v1066_v28 = vpop.f32.mrf.mxu1 }
 0x241   :  { %1255 = vst [vmem:[#allocation5 + $0x40] sm:$0xff] %v993_v27  ;;  %1257 = vst [vmem:[#allocation5 + $0x50] sm:$0xff] %v1066_v28 }
 0x242   :  { %v995_v29 = vpop.f32.mrf.mxu0  ;;  %v1068_v30 = vpop.f32.mrf.mxu1 }
 0x243   :  { %1256 = vst [vmem:[#allocation5 + $0x48] sm:$0xff] %v995_v29  ;;  %1258 = vst [vmem:[#allocation5 + $0x58] sm:$0xff] %v1068_v30 }
 0x244   :  { %v999_v54 = vpop.f32.mrf.mxu0  ;;  %v1072_v31 = vpop.f32.mrf.mxu1 }
 0x245   :  { %1263 = vst [vmem:[#allocation5 + $0x80] sm:$0xff] %v999_v54  ;;  %1265 = vst [vmem:[#allocation5 + $0x90] sm:$0xff] %v1072_v31 }
 0x246   :  { %v1001_v32 = vpop.f32.mrf.mxu0  ;;  %v1074_v33 = vpop.f32.mrf.mxu1 }
 0x247   :  { %1264 = vst [vmem:[#allocation5 + $0x88] sm:$0xff] %v1001_v32  ;;  %1266 = vst [vmem:[#allocation5 + $0x98] sm:$0xff] %v1074_v33 }
 0x248   :  { %v1003_v34 = vpop.f32.mrf.mxu0  ;;  %v1076_v36 = vpop.f32.mrf.mxu1 }
 0x249   :  { %1271 = vst [vmem:[#allocation5 + $0xc0] sm:$0xff] %v1003_v34  ;;  %1273 = vst [vmem:[#allocation5 + $0xd0] sm:$0xff] %v1076_v36 }
 0x24a   :  { %v1005_v37 = vpop.f32.mrf.mxu0  ;;  %v1078_v38 = vpop.f32.mrf.mxu1 }
 0x24b   :  { %1272 = vst [vmem:[#allocation5 + $0xc8] sm:$0xff] %v1005_v37  ;;  %1274 = vst [vmem:[#allocation5 + $0xd8] sm:$0xff] %v1078_v38 }
 0x25c   :  { %v1009_v39 = vpop.f32.mrf.mxu0  ;;  %v1082_v40 = vpop.f32.mrf.mxu1 }
 0x25d   :  { %1279 = vst [vmem:[#allocation5 + $0x100] sm:$0xff] %v1009_v39  ;;  %1281 = vst [vmem:[#allocation5 + $0x110] sm:$0xff] %v1082_v40 }
 0x25e   :  { %v1011_v41 = vpop.f32.mrf.mxu0  ;;  %v1084_v42 = vpop.f32.mrf.mxu1 }
 0x25f   :  { %1280 = vst [vmem:[#allocation5 + $0x108] sm:$0xff] %v1011_v41  ;;  %1282 = vst [vmem:[#allocation5 + $0x118] sm:$0xff] %v1084_v42 }
 0x260   :  { %v1013_v43 = vpop.f32.mrf.mxu0  ;;  %v1086_v44 = vpop.f32.mrf.mxu1 }
 0x261   :  { %1287 = vst [vmem:[#allocation5 + $0x140] sm:$0xff] %v1013_v43  ;;  %1289 = vst [vmem:[#allocation5 + $0x150] sm:$0xff] %v1086_v44 }
 0x262   :  { %v1015_v45 = vpop.f32.mrf.mxu0  ;;  %v1088_v46 = vpop.f32.mrf.mxu1 }
 0x263   :  { %1288 = vst [vmem:[#allocation5 + $0x148] sm:$0xff] %v1015_v45  ;;  %1290 = vst [vmem:[#allocation5 + $0x158] sm:$0xff] %v1088_v46 }
 0x264   :  { %v1019_v47 = vpop.f32.mrf.mxu0  ;;  %v1092_v48 = vpop.f32.mrf.mxu1 }
 0x265   :  { %1295 = vst [vmem:[#allocation5 + $0x180] sm:$0xff] %v1019_v47  ;;  %1297 = vst [vmem:[#allocation5 + $0x190] sm:$0xff] %v1092_v48 }
 0x266   :  { %v1021_v49 = vpop.f32.mrf.mxu0  ;;  %v1094_v50 = vpop.f32.mrf.mxu1 }
 0x267   :  { %1296 = vst [vmem:[#allocation5 + $0x188] sm:$0xff] %v1021_v49  ;;  %1298 = vst [vmem:[#allocation5 + $0x198] sm:$0xff] %v1094_v50 }
 0x268   :  { %v1023_v51 = vpop.f32.mrf.mxu0  ;;  %v1096_v52 = vpop.f32.mrf.mxu1 }
 0x269   :  { %1303 = vst [vmem:[#allocation5 + $0x1c0] sm:$0xff] %v1023_v51  ;;  %1305 = vst [vmem:[#allocation5 + $0x1d0] sm:$0xff] %v1096_v52 }
 0x26a   :  { %v1025_v53 = vpop.f32.mrf.mxu0  ;;  %v1098_v55 = vpop.f32.mrf.mxu1 }
 0x26b   :  { %1304 = vst [vmem:[#allocation5 + $0x1c8] sm:$0xff] %v1025_v53  ;;  %1306 = vst [vmem:[#allocation5 + $0x1d8] sm:$0xff] %v1098_v55 }
 0x26c   :  { %v1135_v56 = vpop.f32.mrf.mxu0  ;;  %v1208_v57 = vpop.f32.mrf.mxu1 }
 0x26d   :  { %1251 = vst [vmem:[#allocation5 + $0x20] sm:$0xff] %v1135_v56  ;;  %1253 = vst [vmem:[#allocation5 + $0x30] sm:$0xff] %v1208_v57 }
 0x26e   :  { %v1137_v58 = vpop.f32.mrf.mxu0  ;;  %v1210_v59 = vpop.f32.mrf.mxu1 }
 0x26f   :  { %1252 = vst [vmem:[#allocation5 + $0x28] sm:$0xff] %v1137_v58  ;;  %1254 = vst [vmem:[#allocation5 + $0x38] sm:$0xff] %v1210_v59 }
 0x270   :  { %v1139_v60 = vpop.f32.mrf.mxu0  ;;  %v1212_v61 = vpop.f32.mrf.mxu1 }
 0x271   :  { %1259 = vst [vmem:[#allocation5 + $0x60] sm:$0xff] %v1139_v60  ;;  %1261 = vst [vmem:[#allocation5 + $0x70] sm:$0xff] %v1212_v61 }
 0x272   :  { %v1141_v35 = vpop.f32.mrf.mxu0  ;;  %v1214_v62 = vpop.f32.mrf.mxu1 }
 0x273   :  { %1260 = vst [vmem:[#allocation5 + $0x68] sm:$0xff] %v1141_v35  ;;  %1262 = vst [vmem:[#allocation5 + $0x78] sm:$0xff] %v1214_v62 }
 0x274   :  { %v1145_v63 = vpop.f32.mrf.mxu0  ;;  %v1218_v0 = vpop.f32.mrf.mxu1 }
 0x275   :  { %1267 = vst [vmem:[#allocation5 + $0xa0] sm:$0xff] %v1145_v63  ;;  %1269 = vst [vmem:[#allocation5 + $0xb0] sm:$0xff] %v1218_v0 }
 0x276   :  { %v1147_v1 = vpop.f32.mrf.mxu0  ;;  %v1220_v2 = vpop.f32.mrf.mxu1 }
 0x277   :  { %1268 = vst [vmem:[#allocation5 + $0xa8] sm:$0xff] %v1147_v1  ;;  %1270 = vst [vmem:[#allocation5 + $0xb8] sm:$0xff] %v1220_v2 }
 0x278   :  { %v1149_v3 = vpop.f32.mrf.mxu0  ;;  %v1222_v4 = vpop.f32.mrf.mxu1 }
 0x279   :  { %1275 = vst [vmem:[#allocation5 + $0xe0] sm:$0xff] %v1149_v3  ;;  %1277 = vst [vmem:[#allocation5 + $0xf0] sm:$0xff] %v1222_v4 }
 0x27a   :  { %v1151_v5 = vpop.f32.mrf.mxu0  ;;  %v1224_v6 = vpop.f32.mrf.mxu1 }
 0x27b   :  { %1276 = vst [vmem:[#allocation5 + $0xe8] sm:$0xff] %v1151_v5  ;;  %1278 = vst [vmem:[#allocation5 + $0xf8] sm:$0xff] %v1224_v6 }
 0x27c   :  { %v1155_v7 = vpop.f32.mrf.mxu0  ;;  %v1228_v11 = vpop.f32.mrf.mxu1 }
 0x27d   :  { %1283 = vst [vmem:[#allocation5 + $0x120] sm:$0xff] %v1155_v7  ;;  %1285 = vst [vmem:[#allocation5 + $0x130] sm:$0xff] %v1228_v11 }
 0x27e   :  { %v1157_v12 = vpop.f32.mrf.mxu0  ;;  %v1230_v13 = vpop.f32.mrf.mxu1 }
 0x27f   :  { %1284 = vst [vmem:[#allocation5 + $0x128] sm:$0xff] %v1157_v12  ;;  %1286 = vst [vmem:[#allocation5 + $0x138] sm:$0xff] %v1230_v13 }
 0x280   :  { %v1159_v8 = vpop.f32.mrf.mxu0  ;;  %v1232_v9 = vpop.f32.mrf.mxu1 }
 0x281   :  { %1291 = vst [vmem:[#allocation5 + $0x160] sm:$0xff] %v1159_v8  ;;  %1293 = vst [vmem:[#allocation5 + $0x170] sm:$0xff] %v1232_v9 }
 0x282   :  { %v1161_v10 = vpop.f32.mrf.mxu0  ;;  %v1234_v14 = vpop.f32.mrf.mxu1 }
 0x283   :  { %1292 = vst [vmem:[#allocation5 + $0x168] sm:$0xff] %v1161_v10  ;;  %1294 = vst [vmem:[#allocation5 + $0x178] sm:$0xff] %v1234_v14 }
 0x284   :  { %v1165_v16 = vpop.f32.mrf.mxu0  ;;  %v1238_v18 = vpop.f32.mrf.mxu1 }
 0x285   :  { %1299 = vst [vmem:[#allocation5 + $0x1a0] sm:$0xff] %v1165_v16  ;;  %1301 = vst [vmem:[#allocation5 + $0x1b0] sm:$0xff] %v1238_v18 }
 0x286   :  { %v1167_v15 = vpop.f32.mrf.mxu0  ;;  %v1240_v17 = vpop.f32.mrf.mxu1 }
 0x287   :  { %1300 = vst [vmem:[#allocation5 + $0x1a8] sm:$0xff] %v1167_v15  ;;  %1302 = vst [vmem:[#allocation5 + $0x1b8] sm:$0xff] %v1240_v17 }
 0x288   :  { %v1169_v19 = vpop.f32.mrf.mxu0  ;;  %v1242_v20 = vpop.f32.mrf.mxu1 }
 0x289   :  { %1307 = vst [vmem:[#allocation5 + $0x1e0] sm:$0xff] %v1169_v19  ;;  %1309 = vst [vmem:[#allocation5 + $0x1f0] sm:$0xff] %v1242_v20 }
 0x28a   :  { %v1171_v21 = vpop.f32.mrf.mxu0  ;;  %v1244_v22 = vpop.f32.mrf.mxu1 }
 0x28b   :  { %1308 = vst [vmem:[#allocation5 + $0x1e8] sm:$0xff] %v1171_v21  ;;  %1310 = vst [vmem:[#allocation5 + $0x1f8] sm:$0xff] %v1244_v22 }
 0x28c   :  { %1688 = shalt.err (!%p1685_p9)
}
 0x28d   :  { %s1706_s15 = smov 1024   ;;  %s1707_s16 = smov 64  }
 0x28e   :  { %1322 = dma.vmem_to_hbm [thread:$0]  %s1317_s13, 8192, %s2010_s4, [#allocation4], %s1706_s15, %s1706_s15, %s1707_s16  }
 0x28f   :  { %1699 = dma.done.wait [#allocation4], 8192  }
 0x290   :  { %1700 = vsyncadd [#allocation4], 4294959104 }
 0x291   :  { %1326 = vsyncpa [#allocation3], 1 }
 0x292   :  { %1327 = vsyncpa [#allocation4], 1 }

</bundles_post_ra>
